<compile_context>
chip_gen: v6e
topology: v6e:2x2x1
jax: 0.10.0
libtpu: 0.0.40
codegen_flags: <defaults>
</compile_context>

<pallas_src>
import jax
import jax.numpy as jnp
from jax.experimental import pallas as pl
from jax.experimental.pallas import tpu as pltpu


def _round_up(x, m):
    return ((x + m - 1) // m) * m


def _fcnn_kernel(x_ref, w1_ref, b1_ref, w2_ref, b2_ref, w3_ref, b3_ref, o_ref):
    x = x_ref[...]                                                   # (S, TB)

    # Layer 1: (16, S) @ (S, TB) + (16, 1) -> relu        (MXU, f32 accumulate)
    h1 = jnp.dot(w1_ref[...], x, preferred_element_type=jnp.float32) + b1_ref[...]
    h1 = jnp.maximum(h1, 0.0)                                        # (16, TB)

    # Layer 2: (4, 16) @ (16, TB) + (4, 1) -> relu        (MXU)
    h2 = jnp.dot(w2_ref[...], h1, preferred_element_type=jnp.float32) + b2_ref[...]
    h2 = jnp.maximum(h2, 0.0)                                        # (4, TB)

    # Layer 3 (4 -> 1): VPU multiply + 4-sublane reduce (XLU has free slots);
    # avoids an MXU pass whose result would occupy 1 of 128 rows.
    o_ref[...] = jnp.sum(h2 * w3_ref[...], axis=0, keepdims=True) + b3_ref[...]


def fcnn_forward_t(xt, params, *, tile_b=32768):
    """Core kernel entry.  xt: (stateSize, B) — features on sublanes, batch on
    lanes (float32 or bfloat16).  Returns (1, B) float32."""
    S, B = xt.shape
    if xt.dtype not in (jnp.dtype(jnp.float32), jnp.dtype(jnp.bfloat16)):
        xt = xt.astype(jnp.float32)
    w1 = params["w1"].astype(xt.dtype)        # tiny (16, S) cast, done once

    # ---- batch-tile policy -------------------------------------------------
    tile_b = max(128, _round_up(int(tile_b), 128))
    bp128 = _round_up(B, 128)
    # Small-batch clamp: never pad more than one 128-lane tile past B.
    tile_b = min(tile_b, bp128)
    # Large-batch cap: keep >= 4 grid steps so dimension_semantics=("parallel",)
    # can spread work over v7x's 2 TensorCores; floor at 4096 lanes so the
    # per-step pipeline overhead stays negligible.
    if bp128 >= 4 * 4096:
        tile_b = min(tile_b, max(4096, _round_up(-(-bp128 // 4), 128)))
    num_tiles = pl.cdiv(B, tile_b)

    # VMEM footprint estimate (double-buffered x + h1 + h2 + double-buffered
    # out) — only raise the scoped limit if we'd exceed the conservative v5e
    # default, leaving headroom for compiler temporaries.
    xb = jnp.dtype(xt.dtype).itemsize
    est = 2 * S * tile_b * xb + (16 + 4) * tile_b * 4 + 2 * tile_b * 4 + 64 * 1024
    vmem_limit = int(min(2 * est, 100 * 1024 * 1024)) if est > 12 * 1024 * 1024 else None

    const = lambda i: (0, 0)   # weights/biases stay resident across the grid

    cost = pl.CostEstimate(
        flops=2 * B * (16 * S + 16 * 4 + 4) + 2 * B * (16 + 4),
        transcendentals=0,
        bytes_accessed=B * S * xb + B * 4 + (16 * S + 16 + 4 * 16 + 4 + 4 + 1) * 4,
    )

    return pl.pallas_call(
        _fcnn_kernel,
        out_shape=jax.ShapeDtypeStruct((1, B), jnp.float32),
        grid=(num_tiles,),
        in_specs=[
            pl.BlockSpec((S, tile_b), lambda i: (0, i)),   # x tile (ragged tail OK)
            pl.BlockSpec((16, S), const),                  # w1 (resident)
            pl.BlockSpec((16, 1), const),                  # b1
            pl.BlockSpec((4, 16), const),                  # w2
            pl.BlockSpec((4, 1), const),                   # b2
            pl.BlockSpec((4, 1), const),                   # w3
            pl.BlockSpec((1, 1), const),                   # b3
        ],
        out_specs=pl.BlockSpec((1, tile_b), lambda i: (0, i)),   # lane-dense
        compiler_params=pltpu.CompilerParams(
            dimension_semantics=("parallel",),
            vmem_limit_bytes=vmem_limit,
        ),
        cost_estimate=cost,
    )(xt, w1, params["b1"], params["w2"], params["b2"], params["w3"], params["b3"])


def fcnn_forward(x, params, *, tile_b=32768):
    """x: (B, stateSize) (torch `fcnn.forward` layout).  Returns (B, 1) float32.

    The kernel consumes x feature-major; the transpose here is one extra XLA
    pass over x — if the producer can emit x as (stateSize, B) (or bfloat16),
    call `fcnn_forward_t` directly to skip it.
    """
    if x.dtype not in (jnp.dtype(jnp.float32), jnp.dtype(jnp.bfloat16)):
        x = jnp.asarray(x, jnp.float32)           # torch.FloatTensor(x) semantics
    out = fcnn_forward_t(x.T, params, tile_b=tile_b)   # (1, B)
    return out.T                                        # (B, 1)


def init_fcnn_params(state_size, key):
    """Mirrors fcnn._init_weights: weights ~ N(0, 1), biases = 0.
    Torch layout (out_features, in_features); biases as (out, 1); w3 kept as
    (4, 1) (transpose of torch's (1, 4)) so the in-kernel VPU reduce
    broadcasts directly."""
    k1, k2, k3 = jax.random.split(key, 3)
    return {
        "w1": jax.random.normal(k1, (16, state_size), dtype=jnp.float32),
        "b1": jnp.zeros((16, 1), dtype=jnp.float32),
        "w2": jax.random.normal(k2, (4, 16), dtype=jnp.float32),
        "b2": jnp.zeros((4, 1), dtype=jnp.float32),
        "w3": jax.random.normal(k3, (4, 1), dtype=jnp.float32),
        "b3": jnp.zeros((1, 1), dtype=jnp.float32),
    }


def fcnn_reference(x, params):
    """Pure-JAX reference for correctness checking (same math, plain XLA)."""
    h1 = jnp.maximum(params["w1"] @ x.T + params["b1"], 0.0)         # (16, B)
    h2 = jnp.maximum(params["w2"] @ h1 + params["b2"], 0.0)          # (4, B)
    y = jnp.sum(params["w3"] * h2, axis=0, keepdims=True) + params["b3"]
    return y.T                                                       # (B, 1)


if __name__ == "__main__":
    key = jax.random.PRNGKey(0)
    k_x, k_p, k_x2 = jax.random.split(key, 3)

    state_size = 8  # "stateSize" of the NEURWIN state vector

    params = init_fcnn_params(state_size, k_p)

    # Small-batch check (typical NEURWIN use): tile clamps down to one
    # 128-lane tile, single grid step.
    batch = 8
    x = jax.random.normal(k_x, (batch, state_size), dtype=jnp.float32)
    out = jax.block_until_ready(fcnn_forward(x, params))
    ref = fcnn_reference(x, params)
    assert out.shape == (batch, 1)
    assert jnp.allclose(out, ref, atol=1e-5, rtol=1e-5)

    # Multi-tile + ragged-tail check (forces a small tile so the grid has 4
    # steps and the last block's padded lanes exercise masked output stores).
    batch2 = 1000
    x2 = jax.random.normal(k_x2, (batch2, state_size), dtype=jnp.float32)
    out2 = jax.block_until_ready(fcnn_forward(x2, params, tile_b=256))
    ref2 = fcnn_reference(x2, params)
    assert out2.shape == (batch2, 1)
    assert jnp.allclose(out2, ref2, atol=1e-5, rtol=1e-5)

    # Default (large-tile) path on the same data, ragged tail without padding.
    out3 = jax.block_until_ready(fcnn_forward(x2, params))
    assert jnp.allclose(out3, ref2, atol=1e-5, rtol=1e-5)

    print("KERNEL_OK")
</pallas_src>

<mosaic_0001>
module attributes {stable_mosaic.version = 11 : i64} {
  func.func @_fcnn_kernel(%arg0: i32, %arg1: memref<8x128xf32, #tpu.memory_space<vmem>>, %arg2: memref<16x8xf32, #tpu.memory_space<vmem>>, %arg3: memref<16x1xf32, #tpu.memory_space<vmem>>, %arg4: memref<4x16xf32, #tpu.memory_space<vmem>>, %arg5: memref<4x1xf32, #tpu.memory_space<vmem>>, %arg6: memref<4x1xf32, #tpu.memory_space<vmem>>, %arg7: memref<1x1xf32, #tpu.memory_space<vmem>>, %arg8: memref<1x128xf32, #tpu.memory_space<vmem>>) attributes {dimension_semantics = [#tpu.dimension_semantics<parallel>], iteration_bounds = array<i64: 1>, scalar_prefetch = 0 : i64, scratch_operands = 0 : i64, tpu.core_type = #tpu.core_type<tc>, window_params = [{transform_indices = @transform_0, window_bounds = array<i64: 8, 128>}, {pipeline_mode = #tpu.pipeline_mode<synchronous>, transform_indices = @transform_1, window_bounds = array<i64: 16, 8>}, {pipeline_mode = #tpu.pipeline_mode<synchronous>, transform_indices = @transform_2, window_bounds = array<i64: 16, 1>}, {pipeline_mode = #tpu.pipeline_mode<synchronous>, transform_indices = @transform_3, window_bounds = array<i64: 4, 16>}, {pipeline_mode = #tpu.pipeline_mode<synchronous>, transform_indices = @transform_4, window_bounds = array<i64: 4, 1>}, {pipeline_mode = #tpu.pipeline_mode<synchronous>, transform_indices = @transform_5, window_bounds = array<i64: 4, 1>}, {pipeline_mode = #tpu.pipeline_mode<synchronous>, transform_indices = @transform_6, window_bounds = array<i64: 1, 1>}, {transform_indices = @transform_7, window_bounds = array<i64: 1, 128>}]} {
    %c0 = arith.constant 0 : index
    %c0_0 = arith.constant 0 : index
    %0 = vector.load %arg1[%c0, %c0_0] : memref<8x128xf32, #tpu.memory_space<vmem>>, vector<8x128xf32>
    %c0_1 = arith.constant 0 : index
    %c0_2 = arith.constant 0 : index
    %1 = vector.load %arg2[%c0_1, %c0_2] : memref<16x8xf32, #tpu.memory_space<vmem>>, vector<16x8xf32>
    %cst = arith.constant dense<0.000000e+00> : vector<16x128xf32>
    %2 = tpu.matmul %1, %0, %cst {dimension_numbers = #tpu.dot_dimension_numbers<[1], [0], [0], [1], [0, 0, 1, 1], [], []>} : vector<16x8xf32>, vector<8x128xf32>, vector<16x128xf32> -> vector<16x128xf32>
    %c0_3 = arith.constant 0 : index
    %c0_4 = arith.constant 0 : index
    %3 = vector.load %arg3[%c0_3, %c0_4] : memref<16x1xf32, #tpu.memory_space<vmem>>, vector<16x1xf32>
    %4 = vector.broadcast %3 : vector<16x1xf32> to vector<16x128xf32>
    %5 = arith.addf %2, %4 : vector<16x128xf32>
    %cst_5 = arith.constant 0.000000e+00 : f32
    %6 = vector.broadcast %cst_5 : f32 to vector<16x128xf32>
    %7 = arith.maximumf %5, %6 : vector<16x128xf32>
    %c0_6 = arith.constant 0 : index
    %c0_7 = arith.constant 0 : index
    %8 = vector.load %arg4[%c0_6, %c0_7] : memref<4x16xf32, #tpu.memory_space<vmem>>, vector<4x16xf32>
    %cst_8 = arith.constant dense<0.000000e+00> : vector<4x128xf32>
    %9 = tpu.matmul %8, %7, %cst_8 {dimension_numbers = #tpu.dot_dimension_numbers<[1], [0], [0], [1], [0, 0, 1, 1], [], []>} : vector<4x16xf32>, vector<16x128xf32>, vector<4x128xf32> -> vector<4x128xf32>
    %c0_9 = arith.constant 0 : index
    %c0_10 = arith.constant 0 : index
    %10 = vector.load %arg5[%c0_9, %c0_10] : memref<4x1xf32, #tpu.memory_space<vmem>>, vector<4x1xf32>
    %11 = vector.broadcast %10 : vector<4x1xf32> to vector<4x128xf32>
    %12 = arith.addf %9, %11 : vector<4x128xf32>
    %cst_11 = arith.constant 0.000000e+00 : f32
    %13 = vector.broadcast %cst_11 : f32 to vector<4x128xf32>
    %14 = arith.maximumf %12, %13 : vector<4x128xf32>
    %c0_12 = arith.constant 0 : index
    %c0_13 = arith.constant 0 : index
    %15 = vector.load %arg6[%c0_12, %c0_13] : memref<4x1xf32, #tpu.memory_space<vmem>>, vector<4x1xf32>
    %16 = vector.broadcast %15 : vector<4x1xf32> to vector<4x128xf32>
    %17 = arith.mulf %14, %16 : vector<4x128xf32>
    %cst_14 = arith.constant dense<0.000000e+00> : vector<128xf32>
    %18 = vector.multi_reduction <add>, %17, %cst_14 [0] : vector<4x128xf32> to vector<128xf32>
    %19 = vector.shape_cast %18 : vector<128xf32> to vector<1x128xf32>
    %c0_15 = arith.constant 0 : index
    %c0_16 = arith.constant 0 : index
    %20 = vector.load %arg7[%c0_15, %c0_16] : memref<1x1xf32, #tpu.memory_space<vmem>>, vector<1x1xf32>
    %21 = vector.broadcast %20 : vector<1x1xf32> to vector<1x128xf32>
    %22 = arith.addf %19, %21 : vector<1x128xf32>
    %c0_17 = arith.constant 0 : index
    %c0_18 = arith.constant 0 : index
    %23 = vector.load %arg8[%c0_17, %c0_18] : memref<1x128xf32, #tpu.memory_space<vmem>>, vector<1x128xf32>
    tpu.vector_store %arg8[%c0_17, %c0_18], %22 {strides = array<i32>} : memref<1x128xf32, #tpu.memory_space<vmem>>, vector<1x128xf32>,
    return
  }
  func.func @transform_0(%arg0: i32) -> (i32, i32) {
    %c0_i32 = arith.constant 0 : i32
    %c0_i32_0 = arith.constant 0 : i32
    return %c0_i32, %arg0 : i32, i32
  }
  func.func @transform_1(%arg0: i32) -> (i32, i32) {
    %c0_i32 = arith.constant 0 : i32
    %c0_i32_0 = arith.constant 0 : i32
    %c0_i32_1 = arith.constant 0 : i32
    return %c0_i32, %c0_i32_0 : i32, i32
  }
  func.func @transform_2(%arg0: i32) -> (i32, i32) {
    %c0_i32 = arith.constant 0 : i32
    %c0_i32_0 = arith.constant 0 : i32
    %c0_i32_1 = arith.constant 0 : i32
    return %c0_i32, %c0_i32_0 : i32, i32
  }
  func.func @transform_3(%arg0: i32) -> (i32, i32) {
    %c0_i32 = arith.constant 0 : i32
    %c0_i32_0 = arith.constant 0 : i32
    %c0_i32_1 = arith.constant 0 : i32
    return %c0_i32, %c0_i32_0 : i32, i32
  }
  func.func @transform_4(%arg0: i32) -> (i32, i32) {
    %c0_i32 = arith.constant 0 : i32
    %c0_i32_0 = arith.constant 0 : i32
    %c0_i32_1 = arith.constant 0 : i32
    return %c0_i32, %c0_i32_0 : i32, i32
  }
  func.func @transform_5(%arg0: i32) -> (i32, i32) {
    %c0_i32 = arith.constant 0 : i32
    %c0_i32_0 = arith.constant 0 : i32
    %c0_i32_1 = arith.constant 0 : i32
    return %c0_i32, %c0_i32_0 : i32, i32
  }
  func.func @transform_6(%arg0: i32) -> (i32, i32) {
    %c0_i32 = arith.constant 0 : i32
    %c0_i32_0 = arith.constant 0 : i32
    %c0_i32_1 = arith.constant 0 : i32
    return %c0_i32, %c0_i32_0 : i32, i32
  }
  func.func @transform_7(%arg0: i32) -> (i32, i32) {
    %c0_i32 = arith.constant 0 : i32
    %c0_i32_0 = arith.constant 0 : i32
    return %c0_i32, %arg0 : i32, i32
  }
}

</mosaic_0001>

<bundles_post_ra>
// kernel: tpu_custom_call.1
= control target key start
LH: loop header
LB: loop body
LE: loop exit
PB: predicated region body
PF: predicated region fallthrough
CT: control target
= control target key end

     0   :  { %s374_s0 = inlined_call_operand.vmem [shape: f32[8,8], index: 0, kind: input, shape index: {}]   ;;  %s375_s1 = inlined_call_operand.vmem [shape: f32[16,8], index: 1, kind: input, shape index: {}]   ;;  %s376_s2 = inlined_call_operand.vmem [shape: f32[16,1], index: 2, kind: input, shape index: {}]   ;;  %s377_s3 = inlined_call_operand.vmem [shape: f32[4,16], index: 3, kind: input, shape index: {}]   ;;  %s378_s4 = inlined_call_operand.vmem [shape: f32[4,1], index: 4, kind: input, shape index: {}]   ;;  %s379_s5 = inlined_call_operand.vmem [shape: f32[4,1], index: 5, kind: input, shape index: {}]   ;;  %s380_s6 = inlined_call_operand.<no memory space> [shape: f32[1,1], index: 6, kind: input, shape index: {}]   ;;  %s381_s7 = inlined_call_operand.hbm [shape: f32[1,8], index: 7, kind: output, shape index: {}]  }
   0x1   :  { %v12_v0 = vstv %s380_s6 }
   0x2   :  { %13 = vst [vmem:[#allocation2] sm:$0x1] %v12_v0 }
   0x3   :  { %v29_v1 = vld [vmem:[%s374_s0] sm:$0xff]  ;;  %vm44_vm0 = vcmask 64512   ;;  %v31_v3 = vld [vmem:[%s375_s1 + $0x8] sm:$0xff]  ;;  %v300_v5 = vmov 0  }
   0x4   :  { %v30_v2 = vld [vmem:[%s375_s1] sm:$0xff]  ;;  %260 = vmatprep.subr.mxu0 %v29_v1  ;;  %v33_v4 = vld [vmem:[%s376_s2 + $0x8] sm:$0xff]  ;;  %276 = vset.pattern.permute.xlu0 %v300_v5 }
   0x5   :  { %262 = vmatprep.mubr.msk.f32.mxu0 %vm44_vm0, %v30_v2  ;;  %261 = vmatpush3.msra.mxu0 %v29_v1 }
   0x6   :  { %14 = vsyncpa [#allocation4], 0  ;;  %263 = vmatmul.mubr.msk.f32.vlgmr.msra.gmra.mxu0 %vm44_vm0, %v31_v3  ;;  %41 = vperm.xlu0 %276, %v33_v4   ;;  %v32_v6 = vld [vmem:[%s376_s2] sm:$0xff]  ;;  %v301_v8 = vmov 0.0   ;;  %vm302_vm1 = vmmov 0   ;;  %vm135_vm2 = vcmask 130048   ;;  %v231_v27 = vlaneseq }
   0x7   :  { %277 = vset.pattern.permute.xlu1 %v300_v5  ;;  %265 = vmatprep.subr.mxu1 %v301_v8  ;;  %v129_v9 = vld [vmem:[%s378_s4] sm:$0xf]  ;;  %vm217_vm3 = vcmask 1043456  }
   0x8   :  { %269 = vmatprep.mubr.msk.f32.mxu1 %vm302_vm1, %v301_v8  ;;  %132 = vperm.xlu1 %277, %v129_v9   ;;  %v210_v10 = vld [vmem:[%s379_s5] sm:$0xf]  ;;  %v232_v30 = vshrl.u32 %v231_v27, 7 }
   0x9   :  { %v225_v7 = vld [vmem:[#allocation2] sm:$0x1] }
   0xa   :  { %36 = vperm.xlu0 %276, %v32_v6   ;;  %v128_v19 = vld [vmem:[%s377_s3] sm:$0xf]  ;;  %v233_v33 = vsub.s32 0, %v232_v30  ;;  %s303_s3 = smov [#allocation3]  }
   0xb   :  { %s243_s4 = sshll.u32 %s303_s3, 4  ;;  %s244_s4 = int_to_ptr.vmem [resolvable:$true] %s243_s4 }
   0xc   :  { %213 = vperm.xlu1 %277, %v210_v10   ;;  %s278_s5 = scalar_lea.vmem %s244_s4, 16  ;;  %s282_s15 = scalar_lea.vmem %s244_s4, 32 }
   0xd   :  { %p279_p0 = scmp.ne.s32.totalorder %s244_s4, %s278_s5  ;;  %p283_p1 = scmp.lt.s32.totalorder %s244_s4, %s244_s4 }
   0xe   :  { %228 = vperm.xlu0 %276, %v225_v7   ;;  %p284_p2 = scmp.lt.s32.totalorder %s282_s15, %s278_s5 }
  0x10   :  { %p285_p3 = por %p284_p2, %p283_p1 }
  0x12   :  { %p286_p4 = pnand %p285_p3, %p279_p0 }
  0x81   :  { %v42_v11 = vpop.permute.xlu0 %41 }
  0x83   :  { %v133_v20 = vpop.permute.xlu1 %132 }
  0x85   :  { %v37_v14 = vpop.permute.xlu0 %36 }
  0x87   :  { %v214_v25 = vpop.permute.xlu1 %213 }
  0x89   :  { %v229_v35 = vpop.permute.xlu0 %228 }
  0x8a   :  { %v234_v37 = vrot.slane %v229_v35, %v233_v33 }
  0xc6   :  { %v264_v12 = vpop.f32.mrf.mxu0 }
  0xc7   :  { %v123_v13 = vadd.f32 %v264_v12, %v42_v11 }
  0xc8   :  { %v117_v15 = vpop.f32.mrf.mxu0 }
  0xc9   :  { %v127_v16 = vmax.f32 %v123_v13, 0.0  ;;  %v118_v17 = vadd.f32 %v117_v15, %v37_v14 }
  0xcb   :  { %v126_v18 = vmax.f32 %v118_v17, 0.0  ;;  %266 = vmatpush3.msra.mxu1 %v127_v16 }
  0xcc   :  { %267 = vmatprep.subr.mxu1 %v301_v8 }
  0xcd   :  { %268 = vmatpush3.msra.mxu1 %v126_v18 }
  0xce   :  { %270 = vmatmul.mubr.msk.f32.vlgmr.msra.gmra.mxu1 %vm135_vm2, %v128_v19 }
 0x18e   :  { %v205_v21 = vpop.f32.mrf.mxu1 }
 0x18f   :  { %v206_v22 = vadd.f32 %v205_v21, %v133_v20 }
 0x190   :  { %v271_v23 = vpop.f32.mrf.mxu1 }
 0x191   :  { %v209_v24 = vmax.f32 %v206_v22, 0.0 }
 0x193   :  { %v216_v26 = vmul.f32 %v214_v25, %v209_v24 }
 0x195   :  { %v218_v28 = vsel %vm217_vm3, %v216_v26, 0.0 }
 0x196   :  { %v219_v29 = vrot.slane %v218_v28, 4 }
 0x198   :  { %v220_v31 = vadd.f32 %v219_v29, %v218_v28 }
 0x19a   :  { %v221_v32 = vrot.slane %v220_v31, 2 }
 0x19c   :  { %v222_v34 = vadd.f32 %v221_v32, %v220_v31 }
 0x19e   :  { %v223_v36 = vrot.slane %v222_v34, 1 }
 0x1a0   :  { %v224_v38 = vadd.f32 %v223_v36, %v222_v34 }
 0x1a2   :  { %v235_v39 = vadd.f32 %v234_v37, %v224_v38 }
 0x1a4   :  { %236 = vst [vmem:[#allocation3] sm:$0x1] %v235_v39 }
 0x1a5   :  { %289 = shalt.err (!%p286_p4)
}
 0x1a6   :  { %246 = dma.vmem_to_hbm [thread:$0]  %s244_s4, 16, %s381_s7, [#allocation4]  }
 0x1a7   :  { %298 = dma.done.wait [#allocation4], 16  }
 0x1a8   :  { %299 = vsyncadd [#allocation4], 4294967280 }
 0x1a9   :  { %250 = vsyncpa [#allocation4], 1 }

</bundles_post_ra>
